<compile_context>
chip_gen: v7x
topology: tpu7x:2x2x1
jax: 0.10.0
libtpu: 0.0.40
codegen_flags: <defaults>
</compile_context>

<pallas_src>
import functools

import jax
import jax.numpy as jnp
from jax.experimental import pallas as pl
from jax.experimental.pallas import tpu as pltpu

OBS_PAD = 8     # pad observation feature axis to a sublane multiple
H_PAD = 128     # pad hidden width to a full lane register
ACT_PAD = 128   # pad action/output width to a full lane register (lane-dense store)


def _round_up(n, m):
    return ((n + m - 1) // m) * m


def qnet_kernel(x_ref, w1_ref, b1_ref, w2_ref, b2_ref, w3_ref, b3_ref, o_ref,
                *, obs_dim):
    x = x_ref[...]                       # [TILE_B, OBS_PAD] f32
    w1 = w1_ref[...]                     # [OBS_PAD, H_PAD]  f32
    tile_b = x.shape[0]

    # ---- Layer 1 on the VPU: tiny contraction (obs_dim=4), unrolled MACs. ----
    h = jnp.broadcast_to(b1_ref[...], (tile_b, H_PAD))          # [TILE_B, H_PAD]
    for k in range(obs_dim):                                    # static unroll
        h = h + x[:, k:k + 1] * w1[k:k + 1, :]
    h1 = jnp.tanh(h)                                            # f32, EUP

    # ---- Layer 2 on the MXU: bf16 operands, f32 accumulate. ----
    h2 = jnp.tanh(
        jnp.dot(h1.astype(jnp.bfloat16), w2_ref[...],
                preferred_element_type=jnp.float32) + b2_ref[...]
    )                                                           # [TILE_B, H_PAD] f32

    # ---- Layer 3 on the MXU, lane-dense f32 store. ----
    o_ref[...] = (
        jnp.dot(h2.astype(jnp.bfloat16), w3_ref[...],
                preferred_element_type=jnp.float32) + b3_ref[...]
    )                                                           # [TILE_B, ACT_PAD]


def qnetwork_forward(x, params, *, tile_b=128):
    """Full 3-layer MLP forward as one batch-tiled Pallas kernel.

    x: [B, obs_dim] float32
    params: dict with w1 [obs,64], b1 [1,64], w2 [64,64], b2 [1,64],
            w3 [64,n_act], b3 [1,n_act]  (all float32, [in, out] layout)
    """
    B, obs_dim = x.shape
    hidden = params["w1"].shape[1]
    n_act = params["w3"].shape[1]

    # Pick a batch tile: multiple of 8, no bigger than the (8-rounded) batch.
    tile_b = max(8, min(_round_up(tile_b, 8), _round_up(B, 8)))
    b_pad = _round_up(B, tile_b)
    grid = (b_pad // tile_b,)

    f32 = jnp.float32
    bf16 = jnp.bfloat16

    # Zero-pad input to [b_pad, OBS_PAD] (padded rows/cols contribute nothing).
    x_p = jnp.zeros((b_pad, OBS_PAD), f32).at[:B, :obs_dim].set(x.astype(f32))

    # Zero-pad parameters to lane-dense shapes; MXU weights in bf16, biases f32.
    w1 = jnp.zeros((OBS_PAD, H_PAD), f32).at[:obs_dim, :hidden].set(params["w1"])
    b1 = jnp.zeros((1, H_PAD), f32).at[:, :hidden].set(params["b1"])
    w2 = (jnp.zeros((H_PAD, H_PAD), f32)
          .at[:hidden, :hidden].set(params["w2"])).astype(bf16)
    b2 = jnp.zeros((1, H_PAD), f32).at[:, :hidden].set(params["b2"])
    w3 = (jnp.zeros((H_PAD, ACT_PAD), f32)
          .at[:hidden, :n_act].set(params["w3"])).astype(bf16)
    b3 = jnp.zeros((1, ACT_PAD), f32).at[:, :n_act].set(params["b3"])

    out = pl.pallas_call(
        functools.partial(qnet_kernel, obs_dim=obs_dim),
        out_shape=jax.ShapeDtypeStruct((b_pad, ACT_PAD), f32),
        grid=grid,
        in_specs=[
            pl.BlockSpec((tile_b, OBS_PAD), lambda i: (i, 0)),   # x: batch-tiled
            pl.BlockSpec((OBS_PAD, H_PAD), lambda i: (0, 0)),    # w1: resident
            pl.BlockSpec((1, H_PAD), lambda i: (0, 0)),          # b1
            pl.BlockSpec((H_PAD, H_PAD), lambda i: (0, 0)),      # w2
            pl.BlockSpec((1, H_PAD), lambda i: (0, 0)),          # b2
            pl.BlockSpec((H_PAD, ACT_PAD), lambda i: (0, 0)),    # w3
            pl.BlockSpec((1, ACT_PAD), lambda i: (0, 0)),        # b3
        ],
        out_specs=pl.BlockSpec((tile_b, ACT_PAD), lambda i: (i, 0)),
        compiler_params=pltpu.CompilerParams(
            dimension_semantics=("parallel",)),   # shard batch across TCs on v7x
    )(x_p, w1, b1, w2, b2, w3, b3)

    return out[:B, :n_act]


def init_params(key, obs_dim=4, hidden=64, n_actions=2):
    """Deterministic init mirroring PyTorch Linear default:
    U(-1/sqrt(fan_in), 1/sqrt(fan_in)). Weights stored as [in, out]."""
    def linear(k, fan_in, fan_out):
        kw, kb = jax.random.split(k)
        bound = 1.0 / jnp.sqrt(jnp.float32(fan_in))
        w = jax.random.uniform(kw, (fan_in, fan_out), jnp.float32, -bound, bound)
        b = jax.random.uniform(kb, (1, fan_out), jnp.float32, -bound, bound)
        return w, b

    k1, k2, k3 = jax.random.split(key, 3)
    w1, b1 = linear(k1, obs_dim, hidden)
    w2, b2 = linear(k2, hidden, hidden)
    w3, b3 = linear(k3, hidden, n_actions)
    return {"w1": w1, "b1": b1, "w2": w2, "b2": b2, "w3": w3, "b3": b3}


if __name__ == "__main__":
    key = jax.random.PRNGKey(0)
    k_params, k_x_small, k_x_big = jax.random.split(key, 3)

    # CartPole-v1: observation_space.shape == (4,), action_space.n == 2
    OBS_DIM, HIDDEN, N_ACT = 4, 64, 2

    params = init_params(k_params, OBS_DIM, HIDDEN, N_ACT)

    def ref_forward(xx):
        h = jnp.tanh(xx @ params["w1"] + params["b1"])
        h = jnp.tanh(h @ params["w2"] + params["b2"])
        return h @ params["w3"] + params["b3"]

    # Small acting-style batch (single grid step, padded to one 8-row tile).
    x_small = jax.random.normal(k_x_small, (2, OBS_DIM), jnp.float32)
    q_small = qnetwork_forward(x_small, params)
    jax.block_until_ready(q_small)
    assert q_small.shape == (2, N_ACT)
    assert jnp.allclose(q_small, ref_forward(x_small), atol=3e-2, rtol=3e-2), \
        "small-batch mismatch vs pure-JAX reference"

    # Replay-buffer-style batch exercising the batch grid (256 / 128 = 2 tiles).
    x_big = jax.random.normal(k_x_big, (256, OBS_DIM), jnp.float32)
    q_big = qnetwork_forward(x_big, params)
    jax.block_until_ready(q_big)
    assert q_big.shape == (256, N_ACT)
    assert jnp.allclose(q_big, ref_forward(x_big), atol=3e-2, rtol=3e-2), \
        "large-batch mismatch vs pure-JAX reference"

    print("KERNEL_OK")
</pallas_src>

<mosaic_0001>
module attributes {stable_mosaic.version = 11 : i64} {
  func.func @qnet_kernel(%arg0: i32, %arg1: memref<8x8xf32, #tpu.memory_space<vmem>>, %arg2: memref<8x128xf32, #tpu.memory_space<vmem>>, %arg3: memref<1x128xf32, #tpu.memory_space<vmem>>, %arg4: memref<128x128xbf16, #tpu.memory_space<vmem>>, %arg5: memref<1x128xf32, #tpu.memory_space<vmem>>, %arg6: memref<128x128xbf16, #tpu.memory_space<vmem>>, %arg7: memref<1x128xf32, #tpu.memory_space<vmem>>, %arg8: memref<8x128xf32, #tpu.memory_space<vmem>>) attributes {dimension_semantics = [#tpu.dimension_semantics<parallel>], iteration_bounds = array<i64: 1>, scalar_prefetch = 0 : i64, scratch_operands = 0 : i64, tpu.core_type = #tpu.core_type<tc>, window_params = [{transform_indices = @transform_0, window_bounds = array<i64: 8, 8>}, {pipeline_mode = #tpu.pipeline_mode<synchronous>, transform_indices = @transform_1, window_bounds = array<i64: 8, 128>}, {pipeline_mode = #tpu.pipeline_mode<synchronous>, transform_indices = @transform_2, window_bounds = array<i64: 1, 128>}, {pipeline_mode = #tpu.pipeline_mode<synchronous>, transform_indices = @transform_3, window_bounds = array<i64: 128, 128>}, {pipeline_mode = #tpu.pipeline_mode<synchronous>, transform_indices = @transform_4, window_bounds = array<i64: 1, 128>}, {pipeline_mode = #tpu.pipeline_mode<synchronous>, transform_indices = @transform_5, window_bounds = array<i64: 128, 128>}, {pipeline_mode = #tpu.pipeline_mode<synchronous>, transform_indices = @transform_6, window_bounds = array<i64: 1, 128>}, {transform_indices = @transform_7, window_bounds = array<i64: 8, 128>}]} {
    %c0 = arith.constant 0 : index
    %c0_0 = arith.constant 0 : index
    %0 = vector.load %arg1[%c0, %c0_0] : memref<8x8xf32, #tpu.memory_space<vmem>>, vector<8x8xf32>
    %c0_1 = arith.constant 0 : index
    %c0_2 = arith.constant 0 : index
    %1 = vector.load %arg2[%c0_1, %c0_2] : memref<8x128xf32, #tpu.memory_space<vmem>>, vector<8x128xf32>
    %c0_3 = arith.constant 0 : index
    %c0_4 = arith.constant 0 : index
    %2 = vector.load %arg3[%c0_3, %c0_4] : memref<1x128xf32, #tpu.memory_space<vmem>>, vector<1x128xf32>
    %3 = vector.shape_cast %2 : vector<1x128xf32> to vector<1x128xf32>
    %4 = vector.broadcast %3 : vector<1x128xf32> to vector<8x128xf32>
    %5 = vector.extract_strided_slice %0 {offsets = [0, 0], sizes = [8, 1], strides = [1, 1]} : vector<8x8xf32> to vector<8x1xf32>
    %6 = vector.extract_strided_slice %1 {offsets = [0, 0], sizes = [1, 128], strides = [1, 1]} : vector<8x128xf32> to vector<1x128xf32>
    %7 = vector.broadcast %5 : vector<8x1xf32> to vector<8x128xf32>
    %8 = vector.broadcast %6 : vector<1x128xf32> to vector<8x128xf32>
    %9 = arith.mulf %7, %8 : vector<8x128xf32>
    %10 = arith.addf %4, %9 : vector<8x128xf32>
    %11 = vector.extract_strided_slice %0 {offsets = [0, 1], sizes = [8, 1], strides = [1, 1]} : vector<8x8xf32> to vector<8x1xf32>
    %12 = vector.extract_strided_slice %1 {offsets = [1, 0], sizes = [1, 128], strides = [1, 1]} : vector<8x128xf32> to vector<1x128xf32>
    %13 = vector.broadcast %11 : vector<8x1xf32> to vector<8x128xf32>
    %14 = vector.broadcast %12 : vector<1x128xf32> to vector<8x128xf32>
    %15 = arith.mulf %13, %14 : vector<8x128xf32>
    %16 = arith.addf %10, %15 : vector<8x128xf32>
    %17 = vector.extract_strided_slice %0 {offsets = [0, 2], sizes = [8, 1], strides = [1, 1]} : vector<8x8xf32> to vector<8x1xf32>
    %18 = vector.extract_strided_slice %1 {offsets = [2, 0], sizes = [1, 128], strides = [1, 1]} : vector<8x128xf32> to vector<1x128xf32>
    %19 = vector.broadcast %17 : vector<8x1xf32> to vector<8x128xf32>
    %20 = vector.broadcast %18 : vector<1x128xf32> to vector<8x128xf32>
    %21 = arith.mulf %19, %20 : vector<8x128xf32>
    %22 = arith.addf %16, %21 : vector<8x128xf32>
    %23 = vector.extract_strided_slice %0 {offsets = [0, 3], sizes = [8, 1], strides = [1, 1]} : vector<8x8xf32> to vector<8x1xf32>
    %24 = vector.extract_strided_slice %1 {offsets = [3, 0], sizes = [1, 128], strides = [1, 1]} : vector<8x128xf32> to vector<1x128xf32>
    %25 = vector.broadcast %23 : vector<8x1xf32> to vector<8x128xf32>
    %26 = vector.broadcast %24 : vector<1x128xf32> to vector<8x128xf32>
    %27 = arith.mulf %25, %26 : vector<8x128xf32>
    %28 = arith.addf %22, %27 : vector<8x128xf32>
    %29 = math.tanh %28 : vector<8x128xf32>
    %30 = arith.truncf %29 : vector<8x128xf32> to vector<8x128xbf16>
    %c0_5 = arith.constant 0 : index
    %c0_6 = arith.constant 0 : index
    %31 = vector.load %arg4[%c0_5, %c0_6] : memref<128x128xbf16, #tpu.memory_space<vmem>>, vector<128x128xbf16>
    %cst = arith.constant dense<0.000000e+00> : vector<8x128xf32>
    %32 = tpu.matmul %30, %31, %cst {dimension_numbers = #tpu.dot_dimension_numbers<[1], [0], [0], [1], [0, 0, 1, 1], [], []>} : vector<8x128xbf16>, vector<128x128xbf16>, vector<8x128xf32> -> vector<8x128xf32>
    %c0_7 = arith.constant 0 : index
    %c0_8 = arith.constant 0 : index
    %33 = vector.load %arg5[%c0_7, %c0_8] : memref<1x128xf32, #tpu.memory_space<vmem>>, vector<1x128xf32>
    %34 = vector.broadcast %33 : vector<1x128xf32> to vector<8x128xf32>
    %35 = arith.addf %32, %34 : vector<8x128xf32>
    %36 = math.tanh %35 : vector<8x128xf32>
    %37 = arith.truncf %36 : vector<8x128xf32> to vector<8x128xbf16>
    %c0_9 = arith.constant 0 : index
    %c0_10 = arith.constant 0 : index
    %38 = vector.load %arg6[%c0_9, %c0_10] : memref<128x128xbf16, #tpu.memory_space<vmem>>, vector<128x128xbf16>
    %cst_11 = arith.constant dense<0.000000e+00> : vector<8x128xf32>
    %39 = tpu.matmul %37, %38, %cst_11 {dimension_numbers = #tpu.dot_dimension_numbers<[1], [0], [0], [1], [0, 0, 1, 1], [], []>} : vector<8x128xbf16>, vector<128x128xbf16>, vector<8x128xf32> -> vector<8x128xf32>
    %c0_12 = arith.constant 0 : index
    %c0_13 = arith.constant 0 : index
    %40 = vector.load %arg7[%c0_12, %c0_13] : memref<1x128xf32, #tpu.memory_space<vmem>>, vector<1x128xf32>
    %41 = vector.broadcast %40 : vector<1x128xf32> to vector<8x128xf32>
    %42 = arith.addf %39, %41 : vector<8x128xf32>
    %c0_14 = arith.constant 0 : index
    %c0_15 = arith.constant 0 : index
    %43 = vector.load %arg8[%c0_14, %c0_15] : memref<8x128xf32, #tpu.memory_space<vmem>>, vector<8x128xf32>
    tpu.vector_store %arg8[%c0_14, %c0_15], %42 {strides = array<i32>} : memref<8x128xf32, #tpu.memory_space<vmem>>, vector<8x128xf32>,
    return
  }
  func.func @transform_0(%arg0: i32) -> (i32, i32) {
    %c0_i32 = arith.constant 0 : i32
    %c0_i32_0 = arith.constant 0 : i32
    return %arg0, %c0_i32 : i32, i32
  }
  func.func @transform_1(%arg0: i32) -> (i32, i32) {
    %c0_i32 = arith.constant 0 : i32
    %c0_i32_0 = arith.constant 0 : i32
    %c0_i32_1 = arith.constant 0 : i32
    return %c0_i32, %c0_i32_0 : i32, i32
  }
  func.func @transform_2(%arg0: i32) -> (i32, i32) {
    %c0_i32 = arith.constant 0 : i32
    %c0_i32_0 = arith.constant 0 : i32
    %c0_i32_1 = arith.constant 0 : i32
    return %c0_i32, %c0_i32_0 : i32, i32
  }
  func.func @transform_3(%arg0: i32) -> (i32, i32) {
    %c0_i32 = arith.constant 0 : i32
    %c0_i32_0 = arith.constant 0 : i32
    %c0_i32_1 = arith.constant 0 : i32
    return %c0_i32, %c0_i32_0 : i32, i32
  }
  func.func @transform_4(%arg0: i32) -> (i32, i32) {
    %c0_i32 = arith.constant 0 : i32
    %c0_i32_0 = arith.constant 0 : i32
    %c0_i32_1 = arith.constant 0 : i32
    return %c0_i32, %c0_i32_0 : i32, i32
  }
  func.func @transform_5(%arg0: i32) -> (i32, i32) {
    %c0_i32 = arith.constant 0 : i32
    %c0_i32_0 = arith.constant 0 : i32
    %c0_i32_1 = arith.constant 0 : i32
    return %c0_i32, %c0_i32_0 : i32, i32
  }
  func.func @transform_6(%arg0: i32) -> (i32, i32) {
    %c0_i32 = arith.constant 0 : i32
    %c0_i32_0 = arith.constant 0 : i32
    %c0_i32_1 = arith.constant 0 : i32
    return %c0_i32, %c0_i32_0 : i32, i32
  }
  func.func @transform_7(%arg0: i32) -> (i32, i32) {
    %c0_i32 = arith.constant 0 : i32
    %c0_i32_0 = arith.constant 0 : i32
    return %arg0, %c0_i32 : i32, i32
  }
}

</mosaic_0001>

<bundles_post_ra>
// kernel: tpu_custom_call.1
= control target key start
LH: loop header
LB: loop body
LE: loop exit
PB: predicated region body
PF: predicated region fallthrough
CT: control target
= control target key end

     0   :  { %12 = vsyncpa [#allocation3], 0  ;;  %s746_s0 = inlined_call_operand.hbm [shape: f32[8,8], index: 0, kind: input, shape index: {}]   ;;  %s747_s1 = inlined_call_operand.hbm [shape: f32[8,128], index: 1, kind: input, shape index: {}]   ;;  %s748_s2 = inlined_call_operand.vmem [shape: f32[1,128], index: 2, kind: input, shape index: {}]   ;;  %s749_s3 = inlined_call_operand.hbm [shape: bf16[128,128], index: 3, kind: input, shape index: {}]   ;;  %s750_s4 = inlined_call_operand.vmem [shape: f32[1,128], index: 4, kind: input, shape index: {}]   ;;  %s751_s5 = inlined_call_operand.hbm [shape: bf16[128,128], index: 5, kind: input, shape index: {}]   ;;  %s752_s6 = inlined_call_operand.vmem [shape: f32[1,128], index: 6, kind: input, shape index: {}]   ;;  %s753_s7 = inlined_call_operand.hbm [shape: f32[8,128], index: 7, kind: output, shape index: {}]  }
   0x1   :  { %13 = vsyncpa [#allocation6], 0 }
   0x2   :  { %14 = vsyncpa [#allocation9], 0 }
   0x3   :  { %15 = vsyncpa [#allocation4], 0  ;;  %s606_s24 = smov [#allocation5]   ;;  %s607_s26 = smov [#allocation2]  }
   0x4   :  { %s32_s25 = sshll.u32 %s606_s24, 4  ;;  %s22_s27 = sshll.u32 %s607_s26, 4  ;;  %s33_s25 = int_to_ptr.vmem [resolvable:$true] %s32_s25  ;;  %s23_s27 = int_to_ptr.vmem [resolvable:$true] %s22_s27 }
   0x5   :  { %s488_s30 = scalar_lea.hbm %s747_s1, 128 }
   0x6   :  { %p489_p0 = scmp.ne.s32.totalorder %s747_s1, %s488_s30  ;;  %p492_p1 = scmp.lt.u32.totalorder %s488_s30, %s747_s1 }
   0x8   :  { %p494_p2 = pnand %p492_p1, %p489_p0 }
   0xa   :  { %497 = shalt.err (!%p494_p2)
}
   0xb   :  { %s498_s12 = scalar_lea.vmem %s33_s25, 128  ;;  %p503_p4 = scmp.lt.s32.totalorder %s33_s25, %s33_s25 }
   0xc   :  { %p499_p3 = scmp.ne.s32.totalorder %s33_s25, %s498_s12  ;;  %p504_p5 = scmp.lt.s32.totalorder %s498_s12, %s498_s12 }
   0xe   :  { %p505_p6 = por %p504_p5, %p503_p4 }
  0x10   :  { %p506_p7 = pnand %p505_p6, %p499_p3 }
  0x12   :  { %509 = shalt.err (!%p506_p7)
}
  0x13   :  { %35 = dma.hbm_to_vmem [thread:$0]  %s747_s1, 128, %s33_s25, [#allocation6]  }
  0x14   :  { %s510_s17 = scalar_lea.hbm %s746_s0, 128 }
  0x15   :  { %p511_p8 = scmp.ne.s32.totalorder %s746_s0, %s510_s17  ;;  %p514_p9 = scmp.lt.u32.totalorder %s510_s17, %s746_s0 }
  0x17   :  { %p516_p10 = pnand %p514_p9, %p511_p8 }
  0x19   :  { %519 = shalt.err (!%p516_p10)
}
  0x1a   :  { %s520_s22 = scalar_lea.vmem %s23_s27, 128  ;;  %p525_p12 = scmp.lt.s32.totalorder %s23_s27, %s23_s27 }
  0x1b   :  { %p521_p11 = scmp.ne.s32.totalorder %s23_s27, %s520_s22  ;;  %p526_p13 = scmp.lt.s32.totalorder %s520_s22, %s520_s22 }
  0x1d   :  { %p527_p0 = por %p526_p13, %p525_p12 }
  0x1f   :  { %p528_p1 = pnand %p527_p0, %p521_p11 }
  0x21   :  { %531 = shalt.err (!%p528_p1)
}
  0x22   :  { %25 = dma.hbm_to_vmem [thread:$0]  %s746_s0, 128, %s23_s27, [#allocation3]  }
  0x23   :  { %s608_s24 = smov [#allocation7]   ;;  %s532_s29 = scalar_lea.hbm %s749_s3, 1024 }
  0x24   :  { %s43_s25 = sshll.u32 %s608_s24, 4  ;;  %p533_p2 = scmp.ne.s32.totalorder %s749_s3, %s532_s29  ;;  %s44_s25 = int_to_ptr.vmem [resolvable:$true] %s43_s25 }
  0x25   :  { %p536_p3 = scmp.lt.u32.totalorder %s532_s29, %s749_s3 }
  0x27   :  { %p538_p4 = pnand %p536_p3, %p533_p2 }
  0x29   :  { %541 = shalt.err (!%p538_p4)
}
  0x2a   :  { %s542_s11 = scalar_lea.vmem %s44_s25, 1024  ;;  %p547_p6 = scmp.lt.s32.totalorder %s44_s25, %s44_s25 }
  0x2b   :  { %p543_p5 = scmp.ne.s32.totalorder %s44_s25, %s542_s11  ;;  %p548_p7 = scmp.lt.s32.totalorder %s542_s11, %s542_s11 }
  0x2d   :  { %p549_p8 = por %p548_p7, %p547_p6 }
  0x2f   :  { %p550_p9 = pnand %p549_p8, %p543_p5 }
  0x31   :  { %553 = shalt.err (!%p550_p9)
}
  0x32   :  { %s609_s0 = smov 64   ;;  %s610_s27 = smov 4  }
  0x33   :  { %49 = dma.hbm_to_vmem [thread:$0]  %s749_s3, 1024, %s44_s25, [#allocation6], %s609_s0, %s609_s0, %s610_s27  }
  0x34   :  { %s611_s14 = smov [#allocation8]   ;;  %s554_s18 = scalar_lea.hbm %s751_s5, 1024 }
  0x35   :  { %s57_s15 = sshll.u32 %s611_s14, 4  ;;  %p555_p10 = scmp.ne.s32.totalorder %s751_s5, %s554_s18  ;;  %s58_s15 = int_to_ptr.vmem [resolvable:$true] %s57_s15 }
  0x36   :  { %p558_p11 = scmp.lt.u32.totalorder %s554_s18, %s751_s5 }
  0x38   :  { %p560_p12 = pnand %p558_p11, %p555_p10 }
  0x3a   :  { %563 = shalt.err (!%p560_p12)
}
  0x3b   :  { %s564_s1 = scalar_lea.vmem %s58_s15, 1024  ;;  %p569_p0 = scmp.lt.s32.totalorder %s58_s15, %s58_s15 }
  0x3c   :  { %p565_p13 = scmp.ne.s32.totalorder %s58_s15, %s564_s1  ;;  %p570_p1 = scmp.lt.s32.totalorder %s564_s1, %s564_s1 }
  0x3e   :  { %p571_p2 = por %p570_p1, %p569_p0 }
  0x40   :  { %p572_p3 = pnand %p571_p2, %p565_p13 }
  0x42   :  { %575 = shalt.err (!%p572_p3)
}
  0x43   :  { %63 = dma.hbm_to_vmem [thread:$0]  %s751_s5, 1024, %s58_s15, [#allocation9], %s609_s0, %s609_s0, %s610_s27  }
  0x44   :  { %598 = dma.done.wait [#allocation3], 128  }
  0x45   :  { %599 = vsyncadd [#allocation3], 4294967168 }
  0x46   :  { %600 = dma.done.wait [#allocation6], 1152  }
  0x47   :  { %601 = vsyncadd [#allocation6], 4294966144 }
  0x48   :  { %602 = dma.done.wait [#allocation9], 1024  }
  0x49   :  { %603 = vsyncadd [#allocation9], 4294966272  ;;  %v612_v0 = vmov 0   ;;  %v613_v1 = vmov 2   ;;  %v614_v2 = vmov 0.0   ;;  %v79_v3 = vld [vmem:[#allocation2] sm:$0xff]  ;;  %v93_v18 = vlaneseq }
  0x4a   :  { %463 = vset.pattern.permute.xlu0 %v612_v0  ;;  %465 = vset.pattern.permute.xlu1 %v613_v1  ;;  %v468_v4 = vld [vmem:[#allocation7] sm:$0xff]   ;;  %v469_v5 = vld [vmem:[#allocation7 + $0x8] sm:$0xff]   ;;  %v615_v6 = vmov 1   ;;  %v616_v7 = vmov 3   ;;  %v470_v8 = vld [vmem:[#allocation7 + $0x10] sm:$0xff]   ;;  %vm617_vm0 = vmmov 0  }
  0x4b   :  { %410 = vmatprep.subr.bf16.mxu0 %v614_v2  ;;  %430 = vmatprep.subr.bf16.mxu1 %v614_v2  ;;  %v471_v9 = vld [vmem:[#allocation7 + $0x18] sm:$0xff]   ;;  %v472_v10 = vld [vmem:[#allocation7 + $0x20] sm:$0xff]   ;;  %v473_v11 = vld [vmem:[#allocation7 + $0x28] sm:$0xff]   ;;  %v94_v19 = vshrl.u32 %v93_v18, 7  ;;  %s618_s29 = smov [#allocation10]  }
  0x4c   :  { %90 = vperm.xlu0 %463, %v79_v3   ;;  %110 = vperm.xlu1 %465, %v79_v3   ;;  %v474_v12 = vld [vmem:[#allocation7 + $0x30] sm:$0xff]   ;;  %v475_v13 = vld [vmem:[#allocation7 + $0x38] sm:$0xff]   ;;  %v476_v14 = vld [vmem:[#allocation8] sm:$0xff]   ;;  %s362_s30 = sshll.u32 %s618_s29, 4  ;;  %s363_s30 = int_to_ptr.vmem [resolvable:$true] %s362_s30 }
  0x4d   :  { %411 = vmatpush3.bf16.msra.mxu0 %v468_v4  ;;  %426 = vmatprep.mubr.msk.bf16.mxu0 %vm617_vm0, %v614_v2  ;;  %v477_v15 = vld [vmem:[#allocation8 + $0x8] sm:$0xff]   ;;  %v478_v16 = vld [vmem:[#allocation8 + $0x10] sm:$0xff]   ;;  %v479_v17 = vld [vmem:[#allocation8 + $0x18] sm:$0xff]   ;;  %v95_v20 = vsub.s32 0, %v94_v19  ;;  %v105_v23 = vsub.s32 1, %v94_v19  ;;  %v115_v25 = vsub.s32 2, %v94_v19  ;;  %p581_p5 = scmp.lt.s32.totalorder %s363_s30, %s363_s30 }
  0x4e   :  { %412 = vmatprep.subr.bf16.mxu0 %v614_v2  ;;  %446 = vmatprep.mubr.msk.bf16.mxu1 %vm617_vm0, %v614_v2  ;;  %v80_v21 = vld [vmem:[#allocation5] sm:$0xff]  ;;  %v125_v27 = vsub.s32 3, %v94_v19  ;;  %v373_v30 = vld [vmem:[%s748_s2] ss:$0 sm:$0xff]  ;;  %v480_v44 = vld [vmem:[#allocation8 + $0x20] sm:$0xff]  }
  0x4f   :  { %431 = vmatpush3.bf16.msra.mxu1 %v476_v14  ;;  %v96_v22 = vrot.slane %v80_v21, %v95_v20  ;;  %v106_v29 = vrot.slane %v80_v21, %v105_v23  ;;  %v116_v31 = vrot.slane %v80_v21, %v115_v25  ;;  %v481_v45 = vld [vmem:[#allocation8 + $0x28] sm:$0xff]   ;;  %v482_v46 = vld [vmem:[#allocation8 + $0x30] sm:$0xff]   ;;  %v483_v47 = vld [vmem:[#allocation8 + $0x38] sm:$0xff]  }
  0x50   :  { %464 = vset.pattern.permute.xlu0 %v615_v6  ;;  %466 = vset.pattern.permute.xlu1 %v616_v7  ;;  %v126_v32 = vrot.slane %v80_v21, %v125_v27  ;;  %v374_v48 = vld [vmem:[%s750_s4] ss:$0 sm:$0xff]  ;;  %s576_s4 = scalar_lea.vmem %s363_s30, 128 }
  0x51   :  { %100 = vperm.xlu0 %464, %v79_v3   ;;  %120 = vperm.xlu1 %466, %v79_v3   ;;  %v383_v56 = vld [vmem:[%s752_s6] ss:$0 sm:$0xff]  ;;  %p577_p4 = scmp.ne.s32.totalorder %s363_s30, %s576_s4  ;;  %p582_p6 = scmp.lt.s32.totalorder %s576_s4, %s576_s4 }
  0x52   :  { %413 = vmatpush3.bf16.msra.mxu0 %v469_v5  ;;  %432 = vmatprep.subr.bf16.mxu1 %v614_v2 }
  0x53   :  { %414 = vmatprep.subr.bf16.mxu0 %v614_v2  ;;  %433 = vmatpush3.bf16.msra.mxu1 %v477_v15  ;;  %p583_p7 = por %p582_p6, %p581_p5 }
  0x54   :  { %434 = vmatprep.subr.bf16.mxu1 %v614_v2 }
  0x55   :  { %467 = vset.pattern.permute.xlu0 %v616_v7  ;;  %p584_p8 = pnand %p583_p7, %p577_p4 }
  0x56   :  { %415 = vmatpush3.bf16.msra.mxu0 %v470_v8 }
  0x57   :  { %416 = vmatprep.subr.bf16.mxu0 %v614_v2  ;;  %435 = vmatpush3.bf16.msra.mxu1 %v478_v16 }
  0x58   :  { %436 = vmatprep.subr.bf16.mxu1 %v614_v2 }
  0x5a   :  { %417 = vmatpush3.bf16.msra.mxu0 %v471_v9 }
  0x5b   :  { %418 = vmatprep.subr.bf16.mxu0 %v614_v2  ;;  %437 = vmatpush3.bf16.msra.mxu1 %v479_v17 }
  0x5c   :  { %438 = vmatprep.subr.bf16.mxu1 %v614_v2 }
  0x5e   :  { %419 = vmatpush3.bf16.msra.mxu0 %v472_v10 }
  0x5f   :  { %420 = vmatprep.subr.bf16.mxu0 %v614_v2  ;;  %439 = vmatpush3.bf16.msra.mxu1 %v480_v44 }
  0x60   :  { %440 = vmatprep.subr.bf16.mxu1 %v614_v2 }
  0x62   :  { %421 = vmatpush3.bf16.msra.mxu0 %v473_v11 }
  0x63   :  { %422 = vmatprep.subr.bf16.mxu0 %v614_v2  ;;  %441 = vmatpush3.bf16.msra.mxu1 %v481_v45 }
  0x64   :  { %442 = vmatprep.subr.bf16.mxu1 %v614_v2 }
  0x66   :  { %423 = vmatpush3.bf16.msra.mxu0 %v474_v12 }
  0x67   :  { %424 = vmatprep.subr.bf16.mxu0 %v614_v2  ;;  %443 = vmatpush3.bf16.msra.mxu1 %v482_v46 }
  0x68   :  { %444 = vmatprep.subr.bf16.mxu1 %v614_v2 }
  0x6a   :  { %425 = vmatpush3.bf16.msra.mxu0 %v475_v13 }
  0x6b   :  { %445 = vmatpush3.bf16.msra.mxu1 %v483_v47 }
  0xcb   :  { %v91_v24 = vpop.permute.xlu0 %90  ;;  %v111_v26 = vpop.permute.xlu1 %110 }
  0xcc   :  { %v97_v28 = vmul.f32 %v96_v22, %v91_v24  ;;  %v117_v37 = vmul.f32 %v116_v31, %v111_v26 }
  0xce   :  { %v98_v35 = vadd.f32 %v373_v30, %v97_v28 }
  0xd0   :  { %v101_v33 = vpop.permute.xlu0 %100  ;;  %v121_v34 = vpop.permute.xlu1 %120 }
  0xd1   :  { %v107_v36 = vmul.f32 %v106_v29, %v101_v33  ;;  %v127_v39 = vmul.f32 %v126_v32, %v121_v34 }
  0xd3   :  { %v108_v38 = vadd.f32 %v107_v36, %v98_v35 }
  0xd5   :  { %v118_v40 = vadd.f32 %v117_v37, %v108_v38 }
  0xd7   :  { %v128_v41 = vadd.f32 %v127_v39, %v118_v40 }
  0xd9   :  { %484 = vtanh.f32 %v128_v41 }
  0xe3   :  { %v485_v42 = vpop.eup %484 }
  0xe4   :  { %v130_v43 = vpack.c.bf16 %v485_v42, %v485_v42 }
  0xe6   :  { %427 = vmatmul.mubr.bf16.vlgmr.msra.gmra.mrb[0].mxu0 %v130_v43 }
 0x1b9   :  { %v236_v49 = vpop.f32.mrb[0].mxu0 }
 0x1ba   :  { %v237_v50 = vadd.f32 %v374_v48, %v236_v49  ;;  %v428_v51 = vpop.f32.mrb[1].mxu0 }
 0x1bb   :  { %v239_v52 = vpop.f32.mrb[2].mxu0 }
 0x1bc   :  { %486 = vtanh.f32 %v237_v50  ;;  %v429_v53 = vpop.f32.mrb[3].mxu0 }
 0x1c6   :  { %v487_v54 = vpop.eup %486 }
 0x1c7   :  { %v243_v55 = vpack.c.bf16 %v487_v54, %v487_v54 }
 0x1c9   :  { %447 = vmatmul.mubr.bf16.vlgmr.msra.gmra.mrb[0].mxu1 %v243_v55 }
 0x29c   :  { %v349_v57 = vpop.f32.mrb[0].mxu1 }
 0x29d   :  { %v350_v58 = vadd.f32 %v383_v56, %v349_v57  ;;  %v448_v59 = vpop.f32.mrb[1].mxu1 }
 0x29e   :  { %v352_v60 = vpop.f32.mrb[2].mxu1 }
 0x29f   :  { %355 = vst [vmem:[#allocation10] sm:$0xff] %v350_v58  ;;  %v449_v61 = vpop.f32.mrb[3].mxu1 }
 0x2a0   :  { %587 = shalt.err (!%p584_p8)
}
 0x2a1   :  { %s588_s6 = scalar_lea.hbm %s753_s7, 128 }
 0x2a2   :  { %p589_p9 = scmp.ne.s32.totalorder %s753_s7, %s588_s6  ;;  %p592_p10 = scmp.lt.u32.totalorder %s588_s6, %s753_s7 }
 0x2a4   :  { %p594_p11 = pnand %p592_p10, %p589_p9 }
 0x2a6   :  { %597 = shalt.err (!%p594_p11)
}
 0x2a7   :  { %365 = dma.vmem_to_hbm [thread:$0]  %s363_s30, 128, %s753_s7, [#allocation4]  }
 0x2a8   :  { %604 = dma.done.wait [#allocation4], 128  }
 0x2a9   :  { %605 = vsyncadd [#allocation4], 4294967168 }
 0x2aa   :  { %369 = vsyncpa [#allocation3], 1 }
 0x2ab   :  { %370 = vsyncpa [#allocation6], 1 }
 0x2ac   :  { %371 = vsyncpa [#allocation9], 1 }
 0x2ad   :  { %372 = vsyncpa [#allocation4], 1 }

</bundles_post_ra>
